<compile_context>
chip_gen: v7x
topology: tpu7x:2x2x1
jax: 0.10.0
libtpu: 0.0.40
codegen_flags: <defaults>
</compile_context>

<pallas_src>
import math

import jax
import jax.numpy as jnp
from jax.experimental import pallas as pl
from jax.experimental.pallas import tpu as pltpu


# ----------------------------------------------------------------------------
# Fused Pallas kernel
# ----------------------------------------------------------------------------
def _timestep_embedder_kernel(t_ref, freqs_ref, w1c_ref, w1s_ref, b1_ref,
                              w2_ref, b2_ref, o_ref):
    # t: (TM, 1) f32, freqs: (1, half) f32
    # w1c / w1s: (half, H), b1/b2: (1, H), w2: (H, H)   -- all in compute dtype
    args = t_ref[...].astype(jnp.float32) * freqs_ref[...].astype(jnp.float32)

    cos_e = jnp.cos(args).astype(w1c_ref.dtype)          # (TM, half)
    sin_e = jnp.sin(args).astype(w1s_ref.dtype)          # (TM, half)

    # mlp[0]: Linear(freq_emb, H).  Concatenation of [cos, sin] is folded into
    # two MXU matmuls against the split weight rows (no layout copy).
    h = jnp.dot(cos_e, w1c_ref[...], preferred_element_type=jnp.float32)
    h = h + jnp.dot(sin_e, w1s_ref[...], preferred_element_type=jnp.float32)
    h = h + b1_ref[...].astype(jnp.float32)

    # mlp[1]: SiLU(x) = x / (1 + exp(-x))   (exp on EUP, one divide on VPU)
    h = h / (1.0 + jnp.exp(-h))

    # mlp[2]: Linear(H, H)
    out = jnp.dot(h.astype(w2_ref.dtype), w2_ref[...],
                  preferred_element_type=jnp.float32)
    out = out + b2_ref[...].astype(jnp.float32)

    o_ref[...] = out.astype(o_ref.dtype)


# ----------------------------------------------------------------------------
# Wrapper
# ----------------------------------------------------------------------------
def make_freqs(freq_emb_size, max_period=10000):
    half = freq_emb_size // 2
    return jnp.exp(
        -math.log(max_period) * jnp.arange(half, dtype=jnp.float32) / half
    )


def timestep_embedder_forward(params, t, *, dtype=jnp.float32,
                              max_period=10000, row_tile=8):
    """t: (N,) scalar timesteps -> (N, hidden_size) embeddings."""
    freq_emb_size, hidden = params["w1"].shape
    half = freq_emb_size // 2
    N = t.shape[0]

    # Pad rows to a sublane-friendly multiple of row_tile; sliced off at end.
    n_tiles = pl.cdiv(N, row_tile)
    Np = n_tiles * row_tile
    t2d = jnp.zeros((Np, 1), jnp.float32).at[:N, 0].set(t.astype(jnp.float32))

    freqs = make_freqs(freq_emb_size, max_period).reshape(1, half)

    w1 = params["w1"].astype(dtype)
    w1_cos, w1_sin = w1[:half], w1[half:]          # split -> no in-kernel concat
    b1 = params["b1"].astype(dtype).reshape(1, hidden)
    w2 = params["w2"].astype(dtype)
    b2 = params["b2"].astype(dtype).reshape(1, hidden)

    out = pl.pallas_call(
        _timestep_embedder_kernel,
        out_shape=jax.ShapeDtypeStruct((Np, hidden), dtype),
        grid=(n_tiles,),
        in_specs=[
            pl.BlockSpec((row_tile, 1), lambda i: (i, 0)),      # t rows (tiled)
            pl.BlockSpec((1, half), lambda i: (0, 0)),          # freqs (resident)
            pl.BlockSpec((half, hidden), lambda i: (0, 0)),     # W1[:half]
            pl.BlockSpec((half, hidden), lambda i: (0, 0)),     # W1[half:]
            pl.BlockSpec((1, hidden), lambda i: (0, 0)),        # b1
            pl.BlockSpec((hidden, hidden), lambda i: (0, 0)),   # W2
            pl.BlockSpec((1, hidden), lambda i: (0, 0)),        # b2
        ],
        out_specs=pl.BlockSpec((row_tile, hidden), lambda i: (i, 0)),
        compiler_params=pltpu.CompilerParams(
            dimension_semantics=("parallel",)
        ),
    )(t2d, freqs, w1_cos, w1_sin, b1, w2, b2)

    return out[:N]


# ----------------------------------------------------------------------------
# Pure-JAX reference (mirrors the PyTorch module)
# ----------------------------------------------------------------------------
def reference_forward(params, t, *, dtype=jnp.float32, max_period=10000):
    freq_emb_size, hidden = params["w1"].shape
    half = freq_emb_size // 2
    freqs = make_freqs(freq_emb_size, max_period)
    args = t.astype(jnp.float32)[:, None] * freqs[None, :]
    emb = jnp.concatenate([jnp.cos(args), jnp.sin(args)], axis=-1).astype(dtype)
    h = emb @ params["w1"].astype(dtype) + params["b1"].astype(dtype)
    h = h / (1.0 + jnp.exp(-h))                                  # SiLU
    out = h @ params["w2"].astype(dtype) + params["b2"].astype(dtype)
    return out.astype(dtype)


# ----------------------------------------------------------------------------
# Main
# ----------------------------------------------------------------------------
if __name__ == "__main__":
    hidden_size = 128
    frequency_embedding_size = 256
    batch = 16
    dtype = jnp.float32

    key = jax.random.PRNGKey(0)
    k_t, k_w1, k_b1, k_w2, k_b2 = jax.random.split(key, 5)

    # Fractional timesteps in [0, 1000), like diffusion schedules.
    t = jax.random.uniform(k_t, (batch,), jnp.float32, 0.0, 1000.0)

    scale = 0.05
    params = {
        # nn.Linear weights stored transposed: (in_features, out_features)
        "w1": scale * jax.random.normal(
            k_w1, (frequency_embedding_size, hidden_size), jnp.float32),
        "b1": scale * jax.random.normal(k_b1, (hidden_size,), jnp.float32),
        "w2": scale * jax.random.normal(
            k_w2, (hidden_size, hidden_size), jnp.float32),
        "b2": scale * jax.random.normal(k_b2, (hidden_size,), jnp.float32),
    }

    out = timestep_embedder_forward(params, t, dtype=dtype)
    out = jax.block_until_ready(out)

    ref = reference_forward(params, t, dtype=dtype)
    assert out.shape == (batch, hidden_size)
    err = jnp.max(jnp.abs(out.astype(jnp.float32) - ref.astype(jnp.float32)))
    assert jnp.allclose(out, ref, atol=2e-4, rtol=2e-4), f"mismatch, max err {err}"

    print("KERNEL_OK")
</pallas_src>

<mosaic_0001>
module attributes {stable_mosaic.version = 11 : i64} {
  func.func @_timestep_embedder_kernel(%arg0: i32, %arg1: memref<8x1xf32, #tpu.memory_space<vmem>>, %arg2: memref<1x128xf32, #tpu.memory_space<vmem>>, %arg3: memref<128x128xf32, #tpu.memory_space<vmem>>, %arg4: memref<128x128xf32, #tpu.memory_space<vmem>>, %arg5: memref<1x128xf32, #tpu.memory_space<vmem>>, %arg6: memref<128x128xf32, #tpu.memory_space<vmem>>, %arg7: memref<1x128xf32, #tpu.memory_space<vmem>>, %arg8: memref<8x128xf32, #tpu.memory_space<vmem>>) attributes {dimension_semantics = [#tpu.dimension_semantics<parallel>], iteration_bounds = array<i64: 2>, scalar_prefetch = 0 : i64, scratch_operands = 0 : i64, tpu.core_type = #tpu.core_type<tc>, window_params = [{transform_indices = @transform_0, window_bounds = array<i64: 8, 1>}, {pipeline_mode = #tpu.pipeline_mode<synchronous>, transform_indices = @transform_1, window_bounds = array<i64: 1, 128>}, {pipeline_mode = #tpu.pipeline_mode<synchronous>, transform_indices = @transform_2, window_bounds = array<i64: 128, 128>}, {pipeline_mode = #tpu.pipeline_mode<synchronous>, transform_indices = @transform_3, window_bounds = array<i64: 128, 128>}, {pipeline_mode = #tpu.pipeline_mode<synchronous>, transform_indices = @transform_4, window_bounds = array<i64: 1, 128>}, {pipeline_mode = #tpu.pipeline_mode<synchronous>, transform_indices = @transform_5, window_bounds = array<i64: 128, 128>}, {pipeline_mode = #tpu.pipeline_mode<synchronous>, transform_indices = @transform_6, window_bounds = array<i64: 1, 128>}, {transform_indices = @transform_7, window_bounds = array<i64: 8, 128>}]} {
    %c0 = arith.constant 0 : index
    %c0_0 = arith.constant 0 : index
    %0 = vector.load %arg1[%c0, %c0_0] : memref<8x1xf32, #tpu.memory_space<vmem>>, vector<8x1xf32>
    %c0_1 = arith.constant 0 : index
    %c0_2 = arith.constant 0 : index
    %1 = vector.load %arg2[%c0_1, %c0_2] : memref<1x128xf32, #tpu.memory_space<vmem>>, vector<1x128xf32>
    %2 = vector.broadcast %0 : vector<8x1xf32> to vector<8x128xf32>
    %3 = vector.broadcast %1 : vector<1x128xf32> to vector<8x128xf32>
    %4 = arith.mulf %2, %3 : vector<8x128xf32>
    %5 = math.cos %4 : vector<8x128xf32>
    %6 = math.sin %4 : vector<8x128xf32>
    %c0_3 = arith.constant 0 : index
    %c0_4 = arith.constant 0 : index
    %7 = vector.load %arg3[%c0_3, %c0_4] : memref<128x128xf32, #tpu.memory_space<vmem>>, vector<128x128xf32>
    %cst = arith.constant dense<0.000000e+00> : vector<8x128xf32>
    %8 = tpu.matmul %5, %7, %cst {dimension_numbers = #tpu.dot_dimension_numbers<[1], [0], [0], [1], [0, 0, 1, 1], [], []>} : vector<8x128xf32>, vector<128x128xf32>, vector<8x128xf32> -> vector<8x128xf32>
    %c0_5 = arith.constant 0 : index
    %c0_6 = arith.constant 0 : index
    %9 = vector.load %arg4[%c0_5, %c0_6] : memref<128x128xf32, #tpu.memory_space<vmem>>, vector<128x128xf32>
    %cst_7 = arith.constant dense<0.000000e+00> : vector<8x128xf32>
    %10 = tpu.matmul %6, %9, %cst_7 {dimension_numbers = #tpu.dot_dimension_numbers<[1], [0], [0], [1], [0, 0, 1, 1], [], []>} : vector<8x128xf32>, vector<128x128xf32>, vector<8x128xf32> -> vector<8x128xf32>
    %11 = arith.addf %8, %10 : vector<8x128xf32>
    %c0_8 = arith.constant 0 : index
    %c0_9 = arith.constant 0 : index
    %12 = vector.load %arg5[%c0_8, %c0_9] : memref<1x128xf32, #tpu.memory_space<vmem>>, vector<1x128xf32>
    %13 = vector.broadcast %12 : vector<1x128xf32> to vector<8x128xf32>
    %14 = arith.addf %11, %13 : vector<8x128xf32>
    %cst_10 = arith.constant 0.000000e+00 : f32
    %15 = vector.broadcast %cst_10 : f32 to vector<8x128xf32>
    %16 = arith.subf %15, %14 : vector<8x128xf32>
    %17 = math.exp %16 : vector<8x128xf32>
    %cst_11 = arith.constant 1.000000e+00 : f32
    %18 = vector.broadcast %cst_11 : f32 to vector<8x128xf32>
    %19 = arith.addf %18, %17 : vector<8x128xf32>
    %20 = arith.divf %14, %19 : vector<8x128xf32>
    %c0_12 = arith.constant 0 : index
    %c0_13 = arith.constant 0 : index
    %21 = vector.load %arg6[%c0_12, %c0_13] : memref<128x128xf32, #tpu.memory_space<vmem>>, vector<128x128xf32>
    %cst_14 = arith.constant dense<0.000000e+00> : vector<8x128xf32>
    %22 = tpu.matmul %20, %21, %cst_14 {dimension_numbers = #tpu.dot_dimension_numbers<[1], [0], [0], [1], [0, 0, 1, 1], [], []>} : vector<8x128xf32>, vector<128x128xf32>, vector<8x128xf32> -> vector<8x128xf32>
    %c0_15 = arith.constant 0 : index
    %c0_16 = arith.constant 0 : index
    %23 = vector.load %arg7[%c0_15, %c0_16] : memref<1x128xf32, #tpu.memory_space<vmem>>, vector<1x128xf32>
    %24 = vector.broadcast %23 : vector<1x128xf32> to vector<8x128xf32>
    %25 = arith.addf %22, %24 : vector<8x128xf32>
    %c0_17 = arith.constant 0 : index
    %c0_18 = arith.constant 0 : index
    %26 = vector.load %arg8[%c0_17, %c0_18] : memref<8x128xf32, #tpu.memory_space<vmem>>, vector<8x128xf32>
    tpu.vector_store %arg8[%c0_17, %c0_18], %25 {strides = array<i32>} : memref<8x128xf32, #tpu.memory_space<vmem>>, vector<8x128xf32>,
    return
  }
  func.func @transform_0(%arg0: i32) -> (i32, i32) {
    %c0_i32 = arith.constant 0 : i32
    %c0_i32_0 = arith.constant 0 : i32
    return %arg0, %c0_i32 : i32, i32
  }
  func.func @transform_1(%arg0: i32) -> (i32, i32) {
    %c0_i32 = arith.constant 0 : i32
    %c0_i32_0 = arith.constant 0 : i32
    %c0_i32_1 = arith.constant 0 : i32
    return %c0_i32, %c0_i32_0 : i32, i32
  }
  func.func @transform_2(%arg0: i32) -> (i32, i32) {
    %c0_i32 = arith.constant 0 : i32
    %c0_i32_0 = arith.constant 0 : i32
    %c0_i32_1 = arith.constant 0 : i32
    return %c0_i32, %c0_i32_0 : i32, i32
  }
  func.func @transform_3(%arg0: i32) -> (i32, i32) {
    %c0_i32 = arith.constant 0 : i32
    %c0_i32_0 = arith.constant 0 : i32
    %c0_i32_1 = arith.constant 0 : i32
    return %c0_i32, %c0_i32_0 : i32, i32
  }
  func.func @transform_4(%arg0: i32) -> (i32, i32) {
    %c0_i32 = arith.constant 0 : i32
    %c0_i32_0 = arith.constant 0 : i32
    %c0_i32_1 = arith.constant 0 : i32
    return %c0_i32, %c0_i32_0 : i32, i32
  }
  func.func @transform_5(%arg0: i32) -> (i32, i32) {
    %c0_i32 = arith.constant 0 : i32
    %c0_i32_0 = arith.constant 0 : i32
    %c0_i32_1 = arith.constant 0 : i32
    return %c0_i32, %c0_i32_0 : i32, i32
  }
  func.func @transform_6(%arg0: i32) -> (i32, i32) {
    %c0_i32 = arith.constant 0 : i32
    %c0_i32_0 = arith.constant 0 : i32
    %c0_i32_1 = arith.constant 0 : i32
    return %c0_i32, %c0_i32_0 : i32, i32
  }
  func.func @transform_7(%arg0: i32) -> (i32, i32) {
    %c0_i32 = arith.constant 0 : i32
    %c0_i32_0 = arith.constant 0 : i32
    return %arg0, %c0_i32 : i32, i32
  }
}

</mosaic_0001>

<bundles_post_ra>
// kernel: tpu_custom_call.1
= control target key start
LH: loop header
LB: loop body
LE: loop exit
PB: predicated region body
PF: predicated region fallthrough
CT: control target
= control target key end

     0   :  { %12 = vsyncpa [#allocation3], 0  ;;  %s1754_s0 = inlined_call_operand.vmem [shape: f32[16,1], index: 0, kind: input, shape index: {}]   ;;  %s1755_s1 = inlined_call_operand.vmem [shape: f32[1,128], index: 1, kind: input, shape index: {}]   ;;  %s1756_s2 = inlined_call_operand.hbm [shape: f32[128,128], index: 2, kind: input, shape index: {}]   ;;  %s1757_s3 = inlined_call_operand.hbm [shape: f32[128,128], index: 3, kind: input, shape index: {}]   ;;  %s1758_s4 = inlined_call_operand.vmem [shape: f32[1,128], index: 4, kind: input, shape index: {}]   ;;  %s1759_s5 = inlined_call_operand.hbm [shape: f32[128,128], index: 5, kind: input, shape index: {}]   ;;  %s1760_s6 = inlined_call_operand.vmem [shape: f32[1,128], index: 6, kind: input, shape index: {}]   ;;  %s1761_s7 = inlined_call_operand.hbm [shape: f32[16,128], index: 7, kind: output, shape index: {}]  }
   0x1   :  { %13 = vsyncpa [#allocation6], 0 }
   0x2   :  { %14 = vsyncpa [#allocation4], 0 }
   0x3   :  { %16 = vsyncpa [#allocation4 + $0x1], 0  ;;  %s1485_s24 = smov 0   ;;  %s1487_s25 = smov 0  }
   0x4   :  { %s1489_s26 = smov 0   ;;  %s1491_s27 = smov 0  }
   0x5 LB: > { %1768 = sst [smem:[#allocation12_spill]] %s1423_s26  ;;  %s1506_s28 = sadd.s32 4294967295, %s1427_s27   ;;  %s1427_s27 = sphi %s1491_s27, %s1783_s27   ;;  %s1423_s26 = sphi %s1489_s26, %s1785_s26   ;;  %s1419_s25 = sphi %s1487_s25, %s1787_s25   ;;  %s1415_s24 = sphi %s1485_s24, %s1786_s24  }
   0x6   : > { %s923_s29 = sadd.s32 4294967294, %s1427_s27   ;;  %s1510_s30 = sadd.s32 1, %s1427_s27  }
   0x7   : > { %1769 = sst [smem:[#allocation13_spill]] %s1510_s30  ;;  %s181_s8 = sadd.s32 1, %s1423_s26 }
   0x8   : > { %s178_s9 = ssub.s32 %s1427_s27, %s1510_s30  ;;  %p191_p0 = scmp.ne.s32.totalorder %s1423_s26, %s1419_s25 }
   0x9   : > { %p179_p1 = scmp.eq.s32.totalorder %s178_s9, 0  ;;  %p192_p2 = scmp.eq.s32.totalorder %s1506_s28, 1 }
   0xa   : > { %p197_p3 = scmp.ne.s32.totalorder %s1419_s25, %s1415_s24  ;;  %p198_p4 = scmp.eq.s32.totalorder %s923_s29, 1 }
   0xb   : > { %s1521_s10 = scalar_select %p179_p1, %s1423_s26, %s181_s8  }
   0xc   : > { %p1523_p5 = por %p192_p2, %p191_p0  ;;  %p1527_p6 = por %p198_p4, %p197_p3 }
   0xd   : > { %1770 = sst [smem:[#allocation14_spill]] %s1521_s10  ;;  %p924_p7 = scmp.ge.s32.totalorder %s1427_s27, 1 }
   0xe   : > { %s1771_s11 = scalar_select %p1523_p5, 1, 0 }
   0xf   : > { %s1772_s12 = scalar_select %p1527_p6, 1, 0 }
  0x10   : > { %p205_p8 = scmp.lt.s32.totalorder %s1427_s27, 3  ;;  %p1762_p9 = scmp.eq.s32.totalorder %s1506_s28, 0 }
  0x11   : > { %s1429_s14 = smov [#allocation5]   ;;  %s1430_s17 = smov [#allocation2]  }
  0x12   : > { %p1534_p10 = pnand %p924_p7, %p205_p8  ;;  %s233_s15 = sshll.u32 %s1429_s14, 4  ;;  %s1540_s15 = int_to_ptr.vmem [resolvable:$true] %s233_s15 }
  0x13   : > { %s220_s18 = sshll.u32 %s1430_s17, 4  ;;  %s1431_s19 = smov [#allocation7]   ;;  %s1548_s18 = int_to_ptr.vmem [resolvable:$true] %s220_s18 }
  0x14   : > { %s1773_s13 = scalar_select %p1534_p10, 1, 0 }
  0x15   : > { %p1196_p11 = pneg %p1534_p10  ;;  %s1550_s20 = sshll.u32 %s1431_s19, 4  ;;  %s250_s20 = int_to_ptr.vmem [resolvable:$true] %s1550_s20 }
  0x16   : > { %s1273_s23 = scalar_lea.hbm %s1757_s3, 2048 }
  0x17   : > { %p1544_p12 = pnand %p1762_p9, %p1196_p11  ;;  %p1274_p13 = scmp.ne.s32.totalorder %s1757_s3, %s1273_s23 }
  0x18   : > { %p1280_p3 = scmp.lt.u32.totalorder %s1273_s23, %s1757_s3 }
  0x19   : > { %p1560_p0 = pneg %p1544_p12 }
  0x1b   : > { %p1276_p1 = pnand %p1560_p0, %p1274_p13 }
  0x1d   : > { %p1277_p2 = pneg %p1276_p1 }
  0x1f   : > { %p1282_p4 = pnand %p1280_p3, %p1277_p2 }
  0x21   : > { %1285 = shalt.err (!%p1282_p4)
}
  0x22   : > { %s1286_s19 = scalar_lea.vmem %s1540_s15, 2048  ;;  %p1294_p9 = scmp.lt.s32.totalorder %s1540_s15, %s1540_s15 }
  0x23   : > { %p1287_p7 = scmp.ne.s32.totalorder %s1540_s15, %s1286_s19  ;;  %p1295_p6 = scmp.lt.s32.totalorder %s1286_s19, %s1286_s19 }
  0x25   : > { %p1289_p8 = pnand %p1287_p7, %p1560_p0  ;;  %p1296_p13 = por %p1295_p6, %p1294_p9 }
  0x27   : > { %p1290_p11 = pneg %p1289_p8 }
  0x29   : > { %p1297_p1 = pnand %p1296_p13, %p1290_p11 }
  0x2b   : > { %1300 = shalt.err (!%p1297_p1)
}
  0x2c   : > { %s1432_s21 = smov 128   ;;  %s1433_s22 = smov 8  }
  0x2d   : > { %1202 = dma.hbm_to_vmem [thread:$0]  (!%p1544_p12), %s1757_s3, 2048, %s1540_s15, [#allocation6], %s1432_s21, %s1432_s21, %s1433_s22  }
  0x2e   : > { %s1301_s17 = scalar_lea.hbm %s1756_s2, 2048 }
  0x2f   : > { %p1302_p6 = scmp.ne.s32.totalorder %s1756_s2, %s1301_s17  ;;  %p1308_p3 = scmp.lt.u32.totalorder %s1301_s17, %s1756_s2 }
  0x31   : > { %p1304_p9 = pnand %p1302_p6, %p1560_p0 }
  0x33   : > { %p1305_p2 = pneg %p1304_p9 }
  0x35   : > { %p1310_p4 = pnand %p1308_p3, %p1305_p2 }
  0x37   : > { %1313 = shalt.err (!%p1310_p4)
}
  0x38   : > { %s1314_s15 = scalar_lea.vmem %s1548_s18, 2048  ;;  %p1322_p13 = scmp.lt.s32.totalorder %s1548_s18, %s1548_s18 }
  0x39   : > { %p1315_p7 = scmp.ne.s32.totalorder %s1548_s18, %s1314_s15  ;;  %p1323_p1 = scmp.lt.s32.totalorder %s1314_s15, %s1314_s15 }
  0x3b   : > { %p1317_p8 = pnand %p1315_p7, %p1560_p0  ;;  %p1324_p6 = por %p1323_p1, %p1322_p13 }
  0x3d   : > { %p1318_p11 = pneg %p1317_p8 }
  0x3f   : > { %p1325_p9 = pnand %p1324_p6, %p1318_p11 }
  0x41   : > { %1328 = shalt.err (!%p1325_p9)
}
  0x42   : > { %1199 = dma.hbm_to_vmem [thread:$0]  (!%p1544_p12), %s1756_s2, 2048, %s1548_s18, [#allocation3], %s1432_s21, %s1432_s21, %s1433_s22  }
  0x43   : > { %s1329_s29 = scalar_lea.hbm %s1759_s5, 2048 }
  0x44   : > { %p1330_p2 = scmp.ne.s32.totalorder %s1759_s5, %s1329_s29  ;;  %p1336_p7 = scmp.lt.u32.totalorder %s1329_s29, %s1759_s5 }
  0x46   : > { %p1332_p3 = pnand %p1330_p2, %p1560_p0 }
  0x48   : > { %p1333_p4 = pneg %p1332_p3 }
  0x4a   : > { %p1338_p8 = pnand %p1336_p7, %p1333_p4 }
  0x4c   : > { %1341 = shalt.err (!%p1338_p8)
}
  0x4d   : > { %s1342_s15 = scalar_lea.vmem %s250_s20, 2048  ;;  %p1350_p6 = scmp.lt.s32.totalorder %s250_s20, %s250_s20 }
  0x4e   : > { %p1343_p11 = scmp.ne.s32.totalorder %s250_s20, %s1342_s15  ;;  %p1351_p9 = scmp.lt.s32.totalorder %s1342_s15, %s1342_s15 }
  0x50   : > { %p1345_p13 = pnand %p1343_p11, %p1560_p0  ;;  %p1352_p5 = por %p1351_p9, %p1350_p6 }
  0x52   : > { %p1346_p1 = pneg %p1345_p13 }
  0x54   : > { %p1353_p10 = pnand %p1352_p5, %p1346_p1 }
  0x56   : > { %1356 = shalt.err (!%p1353_p10)
}
  0x57   : > { %1205 = dma.hbm_to_vmem [thread:$0]  (!%p1544_p12), %s1759_s5, 2048, %s250_s20, [#allocation6], %s1432_s21, %s1432_s21, %s1433_s22  }
  0x58   : > { %p1776_p2 = scmp.ne.s32.totalorder %s1773_s13, 0 }
  0x59   : > { %p1777_p0 = scmp.eq.s32.totalorder (!%p1776_p2), %s1506_s28, 0 }
  0x5a   : > { %275 = sbr.rel (%p1776_p2) target bundleno = 791 (0x317), region = 48 }
  0x61   : > { %1402 = dma.done.wait (%p1777_p0), [#allocation3], 2048   ;;  %p1778_p3 = pmov %p1777_p0 }
  0x62   : > { %p1779_p5 = pmov %p1777_p0 }
  0x63   : > { %1404 = vsyncadd (%p1778_p3), [#allocation3], 4294965248 }
  0x64   : > { %1406 = dma.done.wait (%p1779_p5), [#allocation6], 4096   ;;  %p1780_p10 = pmov %p1777_p0 }
  0x65   : > { %p314_p4 = scmp.lt.s32.totalorder %s1506_s28, 1  ;;  %v1434_v0 = vmov 0   ;;  %v555_v2 = vld [vmem:[#allocation5] sm:$0xff]  ;;  %v556_v3 = vld [vmem:[#allocation5 + $0x8] sm:$0xff]  ;;  %v1435_v7 = vmov 0.0|0.0   ;;  %v557_v9 = vld [vmem:[#allocation5 + $0x10] sm:$0xff] }
  0x66   : > { %1408 = vsyncadd (%p1780_p10), [#allocation6], 4294963200  ;;  %1264 = vset.pattern.permute.xlu0 %v1434_v0  ;;  %v539_v4 = vld [vmem:[#allocation2] sm:$0xff]  ;;  %v1107_v5 = vpack.c.bf16 %v556_v3, %v555_v2  ;;  %v540_v6 = vld [vmem:[#allocation2 + $0x8] sm:$0xff]  ;;  %1106 = vmatprep.subr.bf16.mxu0 %v1435_v7  ;;  %vm1436_vm0 = vmmov 0   ;;  %v1437_v32 = vmov 0.0  }
  0x67   : > { %s315_s16 = scalar_select %p314_p4, %s1506_s28, 1  ;;  %1130 = vmatprep.subr.bf16.mxu1 %v1435_v7  ;;  %v1131_v8 = vpack.c.bf16 %v540_v6, %v539_v4  ;;  %v558_v10 = vld [vmem:[#allocation5 + $0x18] sm:$0xff]  ;;  %v541_v11 = vld [vmem:[#allocation2 + $0x10] sm:$0xff]  ;;  %v559_v15 = vld [vmem:[#allocation5 + $0x20] sm:$0xff]  ;;  %1033 = vmatprep.mubr.msk.f32.mxu0 %vm1436_vm0, %v1437_v32  ;;  %v1439_v3 = vmov 2475754826  }
  0x68   : > { %1108 = vmatpush3.bf16.msra.mxu0 %v1107_v5  ;;  %v1110_v12 = vpack.c.bf16 %v558_v10, %v557_v9  ;;  %v542_v13 = vld [vmem:[#allocation2 + $0x18] sm:$0xff]  ;;  %v560_v16 = vld [vmem:[#allocation5 + $0x28] sm:$0xff]  ;;  %v543_v17 = vld [vmem:[#allocation2 + $0x20] sm:$0xff]  ;;  %1068 = vmatprep.mubr.msk.f32.mxu1 %vm1436_vm0, %v1437_v32  ;;  %v1440_v6 = vmov 2131351028   ;;  %s311_s29 = sand.u32 1, %s1419_s25  }
  0x69   : > { %s934_s13 = sshll.u32 %s315_s16, 3  ;;  %1132 = vmatpush3.bf16.msra.mxu1 %v1131_v8  ;;  %1109 = vmatprep.subr.bf16.mxu0 %v1435_v7  ;;  %v1134_v14 = vpack.c.bf16 %v542_v13, %v541_v11  ;;  %v1113_v18 = vpack.c.bf16 %v560_v16, %v559_v15  ;;  %v544_v19 = vld [vmem:[#allocation2 + $0x28] sm:$0xff]  ;;  %v561_v21 = vld [vmem:[#allocation5 + $0x30] sm:$0xff]  ;;  %v562_v22 = vld [vmem:[#allocation5 + $0x38] sm:$0xff]  ;;  %v1441_v10 = vmov 2102212464  }
  0x6a   : > { %s317_s21 = scalar_lea.vmem %s1754_s0, %s934_s13  ;;  %1133 = vmatprep.subr.bf16.mxu1 %v1435_v7  ;;  %v1137_v20 = vpack.c.bf16 %v544_v19, %v543_v17  ;;  %v545_v23 = vld [vmem:[#allocation2 + $0x30] sm:$0xff]  ;;  %v1116_v24 = vpack.c.bf16 %v562_v22, %v561_v21  ;;  %v546_v25 = vld [vmem:[#allocation2 + $0x38] sm:$0xff]  ;;  %v563_v27 = vld [vmem:[#allocation5 + $0x40] sm:$0xff]  ;;  %v1442_v13 = vmov 920167782   ;;  %s933_s8 = sshll.u32 %s311_s29, 3 }
  0x6b   : > { %v318_v1 = vld [vmem:[%s317_s21] sm:$0xff]  ;;  %v1140_v26 = vpack.c.bf16 %v546_v25, %v545_v23  ;;  %v564_v28 = vld [vmem:[#allocation5 + $0x48] sm:$0xff]  ;;  %v565_v34 = vld [vmem:[#allocation5 + $0x50] sm:$0xff]  ;;  %v1443_v16 = vmov 1326507024   ;;  %s947_s19 = sshll.u32 %s1506_s28, 7 }
  0x6c   : > { %322 = vperm.xlu0 %1264, %v318_v1   ;;  %1111 = vmatpush3.bf16.msra.mxu0 %v1110_v12  ;;  %v547_v29 = vld [vmem:[#allocation2 + $0x40] sm:$0xff]  ;;  %v1119_v30 = vpack.c.bf16 %v564_v28, %v563_v27  ;;  %v548_v31 = vld [vmem:[#allocation2 + $0x48] sm:$0xff]  ;;  %v566_v35 = vld [vmem:[#allocation5 + $0x58] sm:$0xff]  ;;  %v1438_v1 = vmov 683565275   ;;  %s313_s15 = scalar_lea.vmem [#allocation8], %s933_s8  ;;  %s1712_s13 = scalar_lea.hbm %s1761_s7, %s947_s19 }
  0x6d   : > { %1135 = vmatpush3.bf16.msra.mxu1 %v1134_v14  ;;  %1112 = vmatprep.subr.bf16.mxu0 %v1435_v7  ;;  %v1143_v33 = vpack.c.bf16 %v548_v31, %v547_v29  ;;  %v549_v36 = vld [vmem:[#allocation2 + $0x50] sm:$0xff]  ;;  %v550_v37 = vld [vmem:[#allocation2 + $0x58] sm:$0xff]  ;;  %v1122_v38 = vpack.c.bf16 %v566_v35, %v565_v34  ;;  %v567_v40 = vld [vmem:[#allocation5 + $0x60] sm:$0xff]  ;;  %s833_s18 = sshll.u32 %s313_s15, 4  ;;  %s820_s20 = scalar_lea.sflag [#allocation4], %s311_s29  ;;  %s1714_s18 = int_to_ptr.vmem [resolvable:$true] %s833_s18 }
  0x6e   : > { %1136 = vmatprep.subr.bf16.mxu1 %v1435_v7  ;;  %v1146_v39 = vpack.c.bf16 %v550_v37, %v549_v36  ;;  %v568_v41 = vld [vmem:[#allocation5 + $0x68] sm:$0xff]  ;;  %v551_v42 = vld [vmem:[#allocation2 + $0x60] sm:$0xff]  ;;  %v569_v46 = vld [vmem:[#allocation5 + $0x70] sm:$0xff]  ;;  %s1357_s9 = scalar_lea.vmem %s1714_s18, 128  ;;  %p1781_p7 = scmp.ne.s32.totalorder %s1771_s11, 0 }
  0x6f   : > { %v552_v43 = vld [vmem:[#allocation2 + $0x68] sm:$0xff]  ;;  %v1125_v44 = vpack.c.bf16 %v568_v41, %v567_v40  ;;  %v570_v47 = vld [vmem:[#allocation5 + $0x78] sm:$0xff]  ;;  %v553_v48 = vld [vmem:[#allocation2 + $0x70] sm:$0xff]  ;;  %p1358_p12 = scmp.ne.s32.totalorder %s1714_s18, %s1357_s9  ;;  %s1444_s28 = smov [#allocation8]  }
  0x70   : > { %1114 = vmatpush3.bf16.msra.mxu0 %v1113_v18  ;;  %v1149_v45 = vpack.c.bf16 %v552_v43, %v551_v42  ;;  %v554_v49 = vld [vmem:[#allocation2 + $0x78] sm:$0xff]  ;;  %v1128_v50 = vpack.c.bf16 %v570_v47, %v569_v46  ;;  %v935_v52 = vld [vmem:[%s1755_s1] ss:$0 sm:$0xff]  ;;  %s1361_s21 = sshll.u32 %s1444_s28, 4  ;;  %s1362_s21 = int_to_ptr.vmem [resolvable:$false] %s1361_s21 }
  0x71   : > { %1138 = vmatpush3.bf16.msra.mxu1 %v1137_v20  ;;  %1115 = vmatprep.subr.bf16.mxu0 %v1435_v7  ;;  %v1152_v51 = vpack.c.bf16 %v554_v49, %v553_v48  ;;  %p1359_p8 = pnand %p1358_p12, %p1781_p7  ;;  %s1363_s22 = scalar_lea.vmem %s1362_s21, 256 }
  0x72   : > { %1139 = vmatprep.subr.bf16.mxu1 %v1435_v7  ;;  %p1364_p13 = scmp.lt.s32.totalorder %s1714_s18, %s1362_s21  ;;  %p1365_p1 = scmp.lt.s32.totalorder %s1363_s22, %s1357_s9 }
  0x73   : > { %p1360_p11 = pneg %p1359_p8 }
  0x74   : > { %1117 = vmatpush3.bf16.msra.mxu0 %v1116_v24  ;;  %p1366_p6 = por %p1365_p1, %p1364_p13 }
  0x75   : > { %1141 = vmatpush3.bf16.msra.mxu1 %v1140_v26  ;;  %1118 = vmatprep.subr.bf16.mxu0 %v1435_v7 }
  0x76   : > { %1142 = vmatprep.subr.bf16.mxu1 %v1435_v7  ;;  %p1367_p9 = pnand %p1366_p6, %p1360_p11 }
  0x78   : > { %1120 = vmatpush3.bf16.msra.mxu0 %v1119_v30 }
  0x79   : > { %1144 = vmatpush3.bf16.msra.mxu1 %v1143_v33  ;;  %1121 = vmatprep.subr.bf16.mxu0 %v1435_v7 }
  0x7a   : > { %1145 = vmatprep.subr.bf16.mxu1 %v1435_v7 }
  0x7c   : > { %1123 = vmatpush3.bf16.msra.mxu0 %v1122_v38 }
  0x7d   : > { %1147 = vmatpush3.bf16.msra.mxu1 %v1146_v39  ;;  %1124 = vmatprep.subr.bf16.mxu0 %v1435_v7 }
  0x7e   : > { %1148 = vmatprep.subr.bf16.mxu1 %v1435_v7 }
  0x80   : > { %1126 = vmatpush3.bf16.msra.mxu0 %v1125_v44 }
  0x81   : > { %1150 = vmatpush3.bf16.msra.mxu1 %v1149_v45  ;;  %1127 = vmatprep.subr.bf16.mxu0 %v1435_v7 }
  0x82   : > { %1151 = vmatprep.subr.bf16.mxu1 %v1435_v7 }
  0x84   : > { %1129 = vmatpush3.bf16.msra.mxu0 %v1128_v50 }
  0x85   : > { %1153 = vmatpush3.bf16.msra.mxu1 %v1152_v51  ;;  %1154 = vmatprep.subr.bf16.mxu0 %v1435_v7 }
  0xeb   : > { %v323_v53 = vpop.permute.xlu0 %322 }
  0xec   : > { %v1671_v54 = vmul.f32 %v935_v52, %v323_v53 }
  0xee   : > { %v335_v55 = vand.u32 2139095040, %v1671_v54  ;;  %v332_v59 = vand.u32 2147483647, %v1671_v54  ;;  %vm334_vm8 = vcmp.lt.s32.totalorder %v1671_v54, 0 }
  0xf0   : > { %v336_v56 = vshrl.u32 %v335_v55, 23  ;;  %v339_v62 = vand.u32 8388607, %v332_v59  ;;  %vm333_vm9 = vcmp.le.f32.partialorder %v332_v59, 0.7853982 }
  0xf2   : > { %v936_v57 = vadd.s32 4294967169, %v336_v56  ;;  %v340_v18 = vor.u32 8388608, %v339_v62 }
  0xf4   : > { %v342_v58 = vadd.s32 1, %v936_v57  ;;  %v380_v33 = vshll.u32 %v340_v18, 8 }
  0xf6   : > { %vm343_vm1 = vcmp.gt.s32.totalorder %v342_v58, 0 }
  0xf7   : > { %v344_v60 = vsel %vm343_vm1, %v342_v58, 0  ;;  %vm424_vm1 = vweird.f32 %v1671_v54 }
  0xf8   : > { %v346_v61 = vand.u32 31, %v344_v60  ;;  %v345_v0 = vshrl.u32 %v344_v60, 5 }
  0xfa   : > { %v347_v63 = vsub.s32 32, %v346_v61  ;;  %v349_v2 = vshll.u32 %v1438_v1, %v346_v61  ;;  %v352_v4 = vshll.u32 %v1439_v3, %v346_v61  ;;  %v355_v9 = vshll.u32 %v1440_v6, %v346_v61 }
  0xfb   : > { %v358_v12 = vshll.u32 %v1441_v10, %v346_v61  ;;  %v361_v15 = vshll.u32 %v1442_v13, %v346_v61  ;;  %vm364_vm2 = vcmp.lt.s32.totalorder %v345_v0, 1  ;;  %vm367_vm3 = vcmp.lt.s32.totalorder %v345_v0, 4 }
  0xfc   : > { %v350_v5 = vshrl.u32 %v1439_v3, %v347_v63  ;;  %v353_v8 = vshrl.u32 %v1440_v6, %v347_v63  ;;  %v356_v11 = vshrl.u32 %v1441_v10, %v347_v63  ;;  %v359_v14 = vshrl.u32 %v1442_v13, %v347_v63 }
  0xfd   : > { %v362_v17 = vshrl.u32 %v1443_v16, %v347_v63  ;;  %v348_v27 = vshrl.u32 %v1438_v1, %v347_v63  ;;  %vm366_vm4 = vcmp.lt.s32.totalorder %v345_v0, 3  ;;  %vm365_vm5 = vcmp.lt.s32.totalorder %v345_v0, 2 }
  0xfe   : > { %v351_v19 = vor.u32 %v350_v5, %v349_v2  ;;  %v354_v20 = vor.u32 %v353_v8, %v352_v4  ;;  %v357_v21 = vor.u32 %v356_v11, %v355_v9  ;;  %v360_v22 = vor.u32 %v359_v14, %v358_v12 }
  0xff   : > { %v363_v23 = vor.u32 %v362_v17, %v361_v15 }
 0x100   : > { %v369_v24 = vsel %vm367_vm3, %v357_v21, 2102212464  ;;  %v372_v25 = vsel %vm364_vm2, %v351_v19, %v354_v20  ;;  %v376_v26 = vsel %vm364_vm2, %v354_v20, %v357_v21  ;;  %v373_v28 = vsel %vm367_vm3, %v360_v22, 920167782 }
 0x101   : > { %v377_v29 = vsel %vm367_vm3, %v363_v23, 1326507024  ;;  %v374_v30 = vsel %vm366_vm4, %v357_v21, %v373_v28  ;;  %v368_v34 = vsel %vm364_vm2, %v348_v27, %v351_v19  ;;  %v370_v35 = vsel %vm366_vm4, %v354_v20, %v369_v24  ;;  %v725_v27 = vld [vmem:[#allocation7] sm:$0xff]  ;;  %v726_v28 = vld [vmem:[#allocation7 + $0x8] sm:$0xff] }
 0x102   : > { %v378_v31 = vsel %vm366_vm4, %v360_v22, %v377_v29  ;;  %v375_v36 = vsel %vm365_vm5, %v372_v25, %v374_v30  ;;  %v371_v42 = vsel %vm365_vm5, %v368_v34, %v370_v35  ;;  %v1155_v29 = vpack.c.bf16 %v726_v28, %v725_v27  ;;  %v727_v30 = vld [vmem:[#allocation7 + $0x10] sm:$0xff]  ;;  %v730_v34 = vld [vmem:[#allocation7 + $0x28] sm:$0xff] }
 0x103   : > { %v379_v37 = vsel %vm365_vm5, %v376_v26, %v378_v31  ;;  %v1680_v40 = vmul.u32.u64.low %v380_v33, %v375_v36  ;;  %v1681_v41 = vmul.u32.u64.high %v380_v33, %v375_v36, %v1680_v40  ;;  %v387_v44 = vmul.u32 %v380_v33, %v371_v42  ;;  %v728_v31 = vld [vmem:[#allocation7 + $0x18] sm:$0xff]  ;;  %v731_v36 = vld [vmem:[#allocation7 + $0x30] sm:$0xff] }
 0x104   : > { %v1677_v38 = vmul.u32.u64.low %v380_v33, %v379_v37  ;;  %v1678_v39 = vmul.u32.u64.high %v380_v33, %v379_v37, %v1677_v38  ;;  %v1158_v33 = vpack.c.bf16 %v728_v31, %v727_v30  ;;  %v736_v42 = vld [vmem:[#allocation7 + $0x58] sm:$0xff] }
 0x105   : > { %v390_v43 = vadd.s32 1, %v1681_v41  ;;  %v733_v38 = vld [vmem:[#allocation7 + $0x40] sm:$0xff] }
 0x106   : > { %vm389_vm6 = vc.u32 %v1678_v39, %v1680_v40  ;;  %v388_v57 = vadd.s32 %v1680_v40, %v1678_v39  ;;  %v734_v39 = vld [vmem:[#allocation7 + $0x48] sm:$0xff] }
 0x107   : > { %v391_v45 = vsel %vm389_vm6, %v390_v43, %v1681_v41  ;;  %v1167_v40 = vpack.c.bf16 %v734_v39, %v733_v38  ;;  %v735_v41 = vld [vmem:[#allocation7 + $0x50] sm:$0xff] }
 0x108   : > { %v392_v46 = vadd.s32 %v391_v45, %v387_v44  ;;  %v1170_v43 = vpack.c.bf16 %v736_v42, %v735_v41  ;;  %v737_v44 = vld [vmem:[#allocation7 + $0x60] sm:$0xff]  ;;  %v738_v45 = vld [vmem:[#allocation7 + $0x68] sm:$0xff] }
 0x10a   : > { %v393_v47 = vadd.s32 536870912, %v392_v46 }
 0x10c   : > { %v394_v48 = vshrl.u32 %v393_v47, 30  ;;  %v739_v47 = vld [vmem:[#allocation7 + $0x70] sm:$0xff] }
 0x10e   : > { %v395_v49 = vshll.u32 %v394_v48, 30  ;;  %v418_v6 = vsub.s32 4, %v394_v48 }
 0x110   : > { %v396_v50 = vsub.s32 %v392_v46, %v395_v49  ;;  %v419_v10 = vsel %vm334_vm8, %v418_v6, %v394_v48  ;;  %v1173_v46 = vpack.c.bf16 %v738_v45, %v737_v44  ;;  %v740_v48 = vld [vmem:[#allocation7 + $0x78] sm:$0xff] }
 0x111   : > { %v421_v12 = vsel %vm333_vm9, 0, %v419_v10  ;;  %v1176_v49 = vpack.c.bf16 %v740_v48, %v739_v47 }
 0x112   : > { %v398_v51 = vsub.s32 0, %v396_v50  ;;  %v528_v13 = vadd.s32 3, %v421_v12  ;;  %v425_v15 = vand.u32 3, %v421_v12 }
 0x114   : > { %v937_v52 = vmin.u32 %v398_v51, %v396_v50  ;;  %v529_v14 = vand.u32 3, %v528_v13  ;;  %vm430_vm11 = vcmp.eq.s32.totalorder %v425_v15, 2  ;;  %vm427_vm13 = vcmp.eq.s32.totalorder %v425_v15, 0 }
 0x115   : > { %vm426_vm15 = vcmp.lt.s32.totalorder %v425_v15, 2 }
 0x116   : > { %v400_v53 = vclz %v937_v52  ;;  %vm534_vm10 = vcmp.eq.s32.totalorder %v529_v14, 2  ;;  %vm531_vm12 = vcmp.eq.s32.totalorder %v529_v14, 0  ;;  %vm530_vm14 = vcmp.lt.s32.totalorder %v529_v14, 2  ;;  %v944_v52 = vld [vmem:[%s1758_s4] ss:$0 sm:$0xff] }
 0x118   : > { %v938_v55 = vadd.s32 4294967294, %v400_v53 }
 0x11a   : > { %vm939_vm7 = vcmp.lt.s32.totalorder %v938_v55, 0 }
 0x11b   : > { %v403_v56 = vsel %vm939_vm7, 0, %v938_v55 }
 0x11c   : > { %v404_v58 = vsub.s32 32, %v403_v56  ;;  %v408_v60 = vsub.s32 4294967266, %v403_v56  ;;  %v405_v61 = vshll.u32 %v396_v50, %v403_v56 }
 0x11e   : > { %v406_v62 = vshrl.u32 %v388_v57, %v404_v58  ;;  %v409_v63 = vadd.s32 127, %v408_v60 }
 0x120   : > { %v407_v0 = vor.u32 %v406_v62, %v405_v61  ;;  %v410_v1 = vshll.u32 %v409_v63, 23 }
 0x122   : > { %v411_v2 = vor.u32 4788187, %v410_v1  ;;  %v414_v4 = vcvt.s32.f32 %v407_v0  ;;  %v945_v0 = vld [vmem:[%s1760_s6] ss:$0 sm:$0xff] }
 0x124   : > { %v412_v3 = vand.u32 2147483647, %v411_v2 }
 0x126   : > { %v415_v5 = vmul.f32 %v414_v4, %v412_v3 }
 0x128   : > { %v416_v8 = vxor.u32 2147483648, %v415_v5 }
 0x12a   : > { %v417_v9 = vsel %vm334_vm8, %v416_v8, %v415_v5 }
 0x12b   : > { %v420_v11 = vsel %vm333_vm9, %v1671_v54, %v417_v9  ;;  %v729_v54 = vld [vmem:[#allocation7 + $0x20] sm:$0xff] }
 0x12c   : > { %1265 = vcosq.f32 %v420_v11  ;;  %v1161_v35 = vpack.c.bf16 %v730_v34, %v729_v54 }
 0x12d   : > { %1267 = vsinq.f32 %v420_v11 }
 0x136   : > { %v1266_v16 = vpop.eup %1265 }
 0x137   : > { %v1268_v17 = vpop.eup %1267  ;;  %v431_v18 = vxor.u32 2147483648, %v1266_v16 }
 0x138   : > { %v428_v19 = vxor.u32 2147483648, %v1268_v17 }
 0x139   : > { %v536_v20 = vsel %vm534_vm10, %v431_v18, %v1268_v17  ;;  %v432_v21 = vsel %vm430_vm11, %v431_v18, %v1268_v17 }
 0x13a   : > { %v533_v59 = vsel %vm531_vm12, %v1266_v16, %v428_v19  ;;  %v429_v22 = vsel %vm427_vm13, %v1266_v16, %v428_v19 }
 0x13b   : > { %v537_v23 = vsel %vm530_vm14, %v533_v59, %v536_v20  ;;  %v433_v24 = vsel %vm426_vm15, %v429_v22, %v432_v21 }
 0x13c   : > { %v538_v25 = vsel %vm424_vm1, nan, %v537_v23  ;;  %v434_v26 = vsel %vm424_vm1, nan, %v433_v24 }
 0x13d   : > { %1034 = vmatmul.mubr.f32.vlgmr.msra.gmra.mrb[0].mxu0 %v538_v25  ;;  %1069 = vmatmul.mubr.f32.vlgmr.msra.gmra.mrb[0].mxu1 %v434_v26 }
 0x13e   : > { %1103 = vmatprep.mubr.msk.f32.mxu0 %vm1436_vm0, %v1437_v32  ;;  %1156 = vmatpush3.bf16.msra.mxu0 %v1155_v29  ;;  %v732_v32 = vld [vmem:[#allocation7 + $0x38] sm:$0xff] }
 0x13f   : > { %1157 = vmatprep.subr.bf16.mxu0 %v1435_v7  ;;  %v1164_v37 = vpack.c.bf16 %v732_v32, %v731_v36 }
 0x142   : > { %1159 = vmatpush3.bf16.msra.mxu0 %v1158_v33 }
 0x143   : > { %1160 = vmatprep.subr.bf16.mxu0 %v1435_v7 }
 0x146   : > { %1162 = vmatpush3.bf16.msra.mxu0 %v1161_v35 }
 0x147   : > { %1163 = vmatprep.subr.bf16.mxu0 %v1435_v7 }
 0x14a   : > { %1165 = vmatpush3.bf16.msra.mxu0 %v1164_v37 }
 0x14b   : > { %1166 = vmatprep.subr.bf16.mxu0 %v1435_v7 }
 0x14e   : > { %1168 = vmatpush3.bf16.msra.mxu0 %v1167_v40 }
 0x14f   : > { %1169 = vmatprep.subr.bf16.mxu0 %v1435_v7 }
 0x152   : > { %1171 = vmatpush3.bf16.msra.mxu0 %v1170_v43 }
 0x153   : > { %1172 = vmatprep.subr.bf16.mxu0 %v1435_v7 }
 0x156   : > { %1174 = vmatpush3.bf16.msra.mxu0 %v1173_v46 }
 0x157   : > { %1175 = vmatprep.subr.bf16.mxu0 %v1435_v7 }
 0x15a   : > { %1177 = vmatpush3.bf16.msra.mxu0 %v1176_v49 }
 0x210   : > { %v637_v50 = vpop.f32.mrb[0].mxu0  ;;  %v707_v51 = vpop.f32.mrb[0].mxu1 }
 0x211   : > { %v708_v53 = vadd.f32 %v707_v51, %v637_v50  ;;  %v1035_v55 = vpop.f32.mrb[1].mxu0  ;;  %v1070_v56 = vpop.f32.mrb[1].mxu1 }
 0x213   : > { %v718_v57 = vadd.f32 %v944_v52, %v708_v53 }
 0x215   : > { %v719_v58 = vsub.f32 0.0, %v718_v57 }
 0x217   : > { %v720_v60 = vmul.f32 1.442695, %v719_v58 }
 0x219   : > { %1269 = vpow2.f32 %v720_v60 }
 0x223   : > { %v1270_v7 = vpop.eup %1269 }
 0x224   : > { %v722_v61 = vadd.f32 1.0, %v1270_v7 }
 0x226   : > { %1271 = vrcp.f32 %v722_v61 }
 0x230   : > { %v1272_v62 = vpop.eup %1271 }
 0x231   : > { %v724_v63 = vmul.f32 %v1272_v62, %v718_v57 }
 0x233   : > { %1104 = vmatmul.mubr.f32.vlgmr.msra.gmra.mrb[2].mxu0 %v724_v63 }
 0x306   : > { %v814_v1 = vpop.f32.mrb[2].mxu0 }
 0x307   : > { %v815_v2 = vadd.f32 %v945_v0, %v814_v1  ;;  %v1105_v3 = vpop.f32.mrb[3].mxu0 }
 0x309   : > { %818 = vst [vmem:[%s313_s15] sm:$0xff] %v815_v2 }
 0x30a   : > { %1370 = shalt.err (!%p1367_p9)
}
 0x30b   : > { %s1371_s30 = scalar_lea.hbm %s1712_s13, 128  ;;  %s1375_s29 = scalar_lea.hbm %s1761_s7, 256 }
 0x30c   : > { %p1372_p2 = scmp.ne.s32.totalorder %s1712_s13, %s1371_s30  ;;  %p1376_p5 = scmp.lt.u32.totalorder %s1712_s13, %s1761_s7 }
 0x30d   : > { %p1377_p10 = scmp.lt.u32.totalorder %s1375_s29, %s1371_s30  ;;  %p1379_p12 = scmp.lt.u32.totalorder %s1371_s30, %s1712_s13 }
 0x30e   : > { %p1373_p0 = pnand %p1372_p2, %p1781_p7 }
 0x30f   : > { %p1378_p4 = por %p1377_p10, %p1376_p5 }
 0x310   : > { %p1374_p3 = pneg %p1373_p0 }
 0x311   : > { %p1380_p8 = por %p1379_p12, %p1378_p4 }
 0x313   : > { %p1381_p11 = pnand %p1380_p8, %p1374_p3 }
 0x315   : > { %1384 = shalt.err (!%p1381_p11)
}
 0x316   : > { %1194 = dma.vmem_to_hbm [thread:$0]  (%p1781_p7), %s1714_s18, 128, %s1712_s13, %s820_s20  }
 0x317 PF: > { %p1216_p13 = scmp.ge.s32.totalorder %s1427_s27, 2  ;;  %s845_s17 = sand.u32 1, %s1415_s24  }
 0x318   : > { %p1782_p1 = scmp.ne.s32.totalorder %s1772_s12, 0  ;;  %s846_s19 = scalar_lea.sflag [#allocation4], %s845_s17 }
 0x31a   : > { %p1207_p6 = pnand %p1216_p13, %p1782_p1 }
 0x31c   : > { %1410 = dma.done.wait (!%p1207_p6), %s846_s19, 128  }
 0x31d   : > { %1412 = vsyncadd (!%p1207_p6), %s846_s19, 4294967168  ;;  %s1783_s27 = sld [smem:[#allocation13_spill]]  ;;  %s1784_s15 = sld [smem:[#allocation12_spill]] }
 0x31e   : > { %s1785_s26 = sld [smem:[#allocation14_spill]]  ;;  %s1786_s24 = smov %s1419_s25 }
 0x323   : > { %p19_p9 = scmp.ge.s32.totalorder %s1783_s27, 4   ;;  %s1787_s25 = smov %s1784_s15 }
 0x325   :  { %21 = sbr.rel (!%p19_p9) target bundleno = 5 (0x5), region = 96 }
 0x32c   :  { %851 = vsyncpa [#allocation3], 1 }
 0x32d   :  { %853 = vsyncpa [#allocation3 + $0x1], 1 }
 0x32e   :  { %854 = vsyncpa [#allocation6], 1 }
 0x32f   :  { %855 = vsyncpa [#allocation4], 1 }
 0x330   :  { %857 = vsyncpa [#allocation4 + $0x1], 1 }

</bundles_post_ra>
